<compile_context>
chip_gen: v6e
topology: v6e:2x2x1
jax: 0.10.0
libtpu: 0.0.40
codegen_flags: <defaults>
</compile_context>

<pallas_src>
import functools

import jax
import jax.numpy as jnp
from jax.experimental import pallas as pl
from jax.experimental.pallas import tpu as pltpu

LANE = 128
SUBLANE = 8


def _round_up(n, m):
    return (n + m - 1) // m * m


def dqn3l60_kernel(x_ref, w1_ref, wh_ref, b_ref, out_ref, *, outputs):
    # x tile: (TB, in_pad) f32.  Weights bf16, biases f32, f32 accumulation.
    x = x_ref[...].astype(jnp.bfloat16)

    # linear1 + ReLU (K = raw input dim, N = 128-padded hidden)
    h = jnp.dot(x, w1_ref[...], preferred_element_type=jnp.float32) + b_ref[0]
    h = jnp.maximum(h, 0.0).astype(jnp.bfloat16)

    # linear2, linear3 + ReLU (stacked hidden weights, static slices)
    for i in range(2):
        h = jnp.dot(h, wh_ref[i], preferred_element_type=jnp.float32) + b_ref[i + 1]
        h = jnp.maximum(h, 0.0).astype(jnp.bfloat16)

    # linear4 (no activation)
    logits = jnp.dot(h, wh_ref[2], preferred_element_type=jnp.float32) + b_ref[3]

    # softmax over dim=1, excluding the padded output lanes.
    lane = jax.lax.broadcasted_iota(jnp.int32, logits.shape, 1)
    logits = jnp.where(lane < outputs, logits, -jnp.inf)
    m = jnp.max(logits, axis=1, keepdims=True)
    e = jnp.exp(logits - m)
    denom = jnp.sum(e, axis=1, keepdims=True)
    out_ref[...] = e / denom          # exact divide: row sums hit 1 to f32 ulps


def init_linear_params(key, fan_in, fan_out):
    """Mirror torch.nn.Linear default init: U[-1/sqrt(in), 1/sqrt(in)].

    Weight stored as (in, out) so the kernel computes x @ W (== x @ W_torch.T).
    """
    kw, kb = jax.random.split(key)
    bound = 1.0 / jnp.sqrt(float(fan_in))
    w = jax.random.uniform(kw, (fan_in, fan_out), jnp.float32, -bound, bound)
    b = jax.random.uniform(kb, (fan_out,), jnp.float32, -bound, bound)
    return w, b


def pack_params(params):
    """Pad hidden/output dims to 128 lanes, stack W2/W3/W4 and all biases.

    params: [(W1,b1), (W2,b2), (W3,b3), (W4,b4)] with W as (in, out), f32.
    Done once at init.  W1 keeps its raw K dim (rounded to the 8-sublane
    granule) so x does not need 128-lane padding in the wrapper.
    """
    (w1, b1), (w2, b2), (w3, b3), (w4, b4) = params
    inputs, hidden = w1.shape
    outputs = w4.shape[1]
    in_pad = _round_up(inputs, SUBLANE)
    p = max(_round_up(hidden, LANE), _round_up(outputs, LANE))  # common lane width

    def pad_w(w, rows, cols):
        return jnp.pad(w, ((0, rows - w.shape[0]), (0, cols - w.shape[1])))

    def pad_b(b):
        return jnp.pad(b.reshape(1, -1),
                       ((0, 0), (0, p - b.shape[-1]))).astype(jnp.float32)

    w1p = pad_w(w1, in_pad, p).astype(jnp.bfloat16)                  # (in_pad, p)
    whp = jnp.stack([pad_w(w2, p, p), pad_w(w3, p, p),
                     pad_w(w4, p, p)]).astype(jnp.bfloat16)          # (3, p, p)
    bp = jnp.stack([pad_b(b1), pad_b(b2), pad_b(b3), pad_b(b4)])     # (4, 1, p)

    packed = (w1p, whp, bp)
    meta = (inputs, outputs, in_pad, p)
    return packed, meta


def _choose_tile(B, block_batch):
    """Pick a batch tile: big enough to amortize per-step overhead, bounded
    padding waste, and >=2 grid tiles for moderate batches (v7x megacore)."""
    b8 = _round_up(B, SUBLANE)
    tb = min(_round_up(block_batch, SUBLANE), b8)
    # Bound batch-padding waste to ~12.5%.
    while tb > SUBLANE and (_round_up(b8, tb) - b8) * 8 > b8:
        tb = _round_up(max(tb // 2, SUBLANE), SUBLANE)
    # Ensure the "parallel" axis has >=2 tiles when there is enough work.
    if b8 > 2 * SUBLANE and _round_up(b8, tb) // tb < 2:
        tb = _round_up((b8 + 1) // 2, SUBLANE)
    b_pad = _round_up(b8, tb)
    return tb, b_pad


def dqn3l60_forward(x, packed, meta, *, block_batch=512):
    """x: (B, inputs) f32. Returns softmax probabilities (B, outputs) f32."""
    w1p, whp, bp = packed
    inputs, outputs, in_pad, p = meta

    B = x.shape[0]
    tb, b_pad = _choose_tile(B, block_batch)

    xp = x.astype(jnp.float32)
    if b_pad != B or in_pad != inputs:
        xp = jnp.pad(xp, ((0, b_pad - B), (0, in_pad - inputs)))

    kernel = functools.partial(dqn3l60_kernel, outputs=outputs)

    out = pl.pallas_call(
        kernel,
        out_shape=jax.ShapeDtypeStruct((b_pad, p), jnp.float32),
        grid=(b_pad // tb,),
        in_specs=[
            pl.BlockSpec((tb, in_pad), lambda i: (i, 0)),     # x: tiled over batch
            pl.BlockSpec(w1p.shape, lambda i: (0, 0)),        # invariant -> DMA'd once
            pl.BlockSpec(whp.shape, lambda i: (0, 0, 0)),
            pl.BlockSpec(bp.shape, lambda i: (0, 0, 0)),
        ],
        out_specs=pl.BlockSpec((tb, p), lambda i: (i, 0)),
        compiler_params=pltpu.CompilerParams(
            dimension_semantics=("parallel",)),
    )(xp, w1p, whp, bp)

    # Consumers that can read the padded (b_pad, 128) slab directly should do
    # so to skip this extra pass; the slice keeps the public API shape exact.
    return out[:B, :outputs]


def reference_forward(x, params):
    """Pure-JAX reference matching the kernel's bf16-weight/activation math."""
    h = x.astype(jnp.float32)
    n = len(params)
    for i, (w, b) in enumerate(params):
        h = jnp.dot(h.astype(jnp.bfloat16), w.astype(jnp.bfloat16),
                    preferred_element_type=jnp.float32) + b
        if i < n - 1:
            h = jnp.maximum(h, 0.0)
    return jax.nn.softmax(h, axis=1)


if __name__ == "__main__":
    batch, inputs, outputs, hidden = 2, 16, 4, 60

    key = jax.random.PRNGKey(0)
    keys = jax.random.split(key, 5)

    x = jax.random.normal(keys[0], (batch, inputs), jnp.float32)

    layer_dims = [(inputs, hidden), (hidden, hidden),
                  (hidden, hidden), (hidden, outputs)]
    params = [init_linear_params(keys[i + 1], fi, fo)
              for i, (fi, fo) in enumerate(layer_dims)]

    packed, meta = pack_params(params)
    out = dqn3l60_forward(x, packed, meta)
    out = jax.block_until_ready(out)

    ref = reference_forward(x, params)

    assert out.shape == (batch, outputs)
    row_sums = jnp.sum(out, axis=1)
    assert bool(jnp.all(jnp.abs(row_sums - 1.0) < 1e-5)), "softmax rows must sum to 1"
    assert bool(jnp.all(jnp.abs(out - ref) < 1e-4)), "kernel mismatch vs reference"

    print("KERNEL_OK")
</pallas_src>

<mosaic_0001>
module attributes {stable_mosaic.version = 11 : i64} {
  func.func @dqn3l60_kernel(%arg0: i32, %arg1: memref<8x16xf32, #tpu.memory_space<vmem>>, %arg2: memref<16x128xbf16, #tpu.memory_space<vmem>>, %arg3: memref<3x128x128xbf16, #tpu.memory_space<vmem>>, %arg4: memref<4x1x128xf32, #tpu.memory_space<vmem>>, %arg5: memref<8x128xf32, #tpu.memory_space<vmem>>) attributes {dimension_semantics = [#tpu.dimension_semantics<parallel>], iteration_bounds = array<i64: 1>, scalar_prefetch = 0 : i64, scratch_operands = 0 : i64, tpu.core_type = #tpu.core_type<tc>, window_params = [{transform_indices = @transform_0, window_bounds = array<i64: 8, 16>}, {pipeline_mode = #tpu.pipeline_mode<synchronous>, transform_indices = @transform_1, window_bounds = array<i64: 16, 128>}, {pipeline_mode = #tpu.pipeline_mode<synchronous>, transform_indices = @transform_2, window_bounds = array<i64: 3, 128, 128>}, {pipeline_mode = #tpu.pipeline_mode<synchronous>, transform_indices = @transform_3, window_bounds = array<i64: 4, 1, 128>}, {transform_indices = @transform_4, window_bounds = array<i64: 8, 128>}]} {
    %c0 = arith.constant 0 : index
    %c0_0 = arith.constant 0 : index
    %0 = vector.load %arg1[%c0, %c0_0] : memref<8x16xf32, #tpu.memory_space<vmem>>, vector<8x16xf32>
    %1 = arith.truncf %0 : vector<8x16xf32> to vector<8x16xbf16>
    %c0_1 = arith.constant 0 : index
    %c0_2 = arith.constant 0 : index
    %2 = vector.load %arg2[%c0_1, %c0_2] : memref<16x128xbf16, #tpu.memory_space<vmem>>, vector<16x128xbf16>
    %cst = arith.constant dense<0.000000e+00> : vector<8x128xf32>
    %3 = tpu.matmul %1, %2, %cst {dimension_numbers = #tpu.dot_dimension_numbers<[1], [0], [0], [1], [0, 0, 1, 1], [], []>} : vector<8x16xbf16>, vector<16x128xbf16>, vector<8x128xf32> -> vector<8x128xf32>
    %c0_3 = arith.constant 0 : index
    %c0_4 = arith.constant 0 : index
    %c0_5 = arith.constant 0 : index
    %4 = vector.load %arg4[%c0_3, %c0_4, %c0_5] : memref<4x1x128xf32, #tpu.memory_space<vmem>>, vector<1x1x128xf32>
    %5 = vector.shape_cast %4 : vector<1x1x128xf32> to vector<1x128xf32>
    %6 = vector.broadcast %5 : vector<1x128xf32> to vector<8x128xf32>
    %7 = arith.addf %3, %6 : vector<8x128xf32>
    %cst_6 = arith.constant 0.000000e+00 : f32
    %8 = vector.broadcast %cst_6 : f32 to vector<8x128xf32>
    %9 = arith.maximumf %7, %8 : vector<8x128xf32>
    %10 = arith.truncf %9 : vector<8x128xf32> to vector<8x128xbf16>
    %c0_7 = arith.constant 0 : index
    %c0_8 = arith.constant 0 : index
    %c0_9 = arith.constant 0 : index
    %11 = vector.load %arg3[%c0_7, %c0_8, %c0_9] : memref<3x128x128xbf16, #tpu.memory_space<vmem>>, vector<1x128x128xbf16>
    %12 = vector.shape_cast %11 : vector<1x128x128xbf16> to vector<128x128xbf16>
    %cst_10 = arith.constant dense<0.000000e+00> : vector<8x128xf32>
    %13 = tpu.matmul %10, %12, %cst_10 {dimension_numbers = #tpu.dot_dimension_numbers<[1], [0], [0], [1], [0, 0, 1, 1], [], []>} : vector<8x128xbf16>, vector<128x128xbf16>, vector<8x128xf32> -> vector<8x128xf32>
    %c1 = arith.constant 1 : index
    %c0_11 = arith.constant 0 : index
    %c0_12 = arith.constant 0 : index
    %14 = vector.load %arg4[%c1, %c0_11, %c0_12] : memref<4x1x128xf32, #tpu.memory_space<vmem>>, vector<1x1x128xf32>
    %15 = vector.shape_cast %14 : vector<1x1x128xf32> to vector<1x128xf32>
    %16 = vector.broadcast %15 : vector<1x128xf32> to vector<8x128xf32>
    %17 = arith.addf %13, %16 : vector<8x128xf32>
    %cst_13 = arith.constant 0.000000e+00 : f32
    %18 = vector.broadcast %cst_13 : f32 to vector<8x128xf32>
    %19 = arith.maximumf %17, %18 : vector<8x128xf32>
    %20 = arith.truncf %19 : vector<8x128xf32> to vector<8x128xbf16>
    %c1_14 = arith.constant 1 : index
    %c0_15 = arith.constant 0 : index
    %c0_16 = arith.constant 0 : index
    %21 = vector.load %arg3[%c1_14, %c0_15, %c0_16] : memref<3x128x128xbf16, #tpu.memory_space<vmem>>, vector<1x128x128xbf16>
    %22 = vector.shape_cast %21 : vector<1x128x128xbf16> to vector<128x128xbf16>
    %cst_17 = arith.constant dense<0.000000e+00> : vector<8x128xf32>
    %23 = tpu.matmul %20, %22, %cst_17 {dimension_numbers = #tpu.dot_dimension_numbers<[1], [0], [0], [1], [0, 0, 1, 1], [], []>} : vector<8x128xbf16>, vector<128x128xbf16>, vector<8x128xf32> -> vector<8x128xf32>
    %c2 = arith.constant 2 : index
    %c0_18 = arith.constant 0 : index
    %c0_19 = arith.constant 0 : index
    %24 = vector.load %arg4[%c2, %c0_18, %c0_19] : memref<4x1x128xf32, #tpu.memory_space<vmem>>, vector<1x1x128xf32>
    %25 = vector.shape_cast %24 : vector<1x1x128xf32> to vector<1x128xf32>
    %26 = vector.broadcast %25 : vector<1x128xf32> to vector<8x128xf32>
    %27 = arith.addf %23, %26 : vector<8x128xf32>
    %cst_20 = arith.constant 0.000000e+00 : f32
    %28 = vector.broadcast %cst_20 : f32 to vector<8x128xf32>
    %29 = arith.maximumf %27, %28 : vector<8x128xf32>
    %30 = arith.truncf %29 : vector<8x128xf32> to vector<8x128xbf16>
    %c2_21 = arith.constant 2 : index
    %c0_22 = arith.constant 0 : index
    %c0_23 = arith.constant 0 : index
    %31 = vector.load %arg3[%c2_21, %c0_22, %c0_23] : memref<3x128x128xbf16, #tpu.memory_space<vmem>>, vector<1x128x128xbf16>
    %32 = vector.shape_cast %31 : vector<1x128x128xbf16> to vector<128x128xbf16>
    %cst_24 = arith.constant dense<0.000000e+00> : vector<8x128xf32>
    %33 = tpu.matmul %30, %32, %cst_24 {dimension_numbers = #tpu.dot_dimension_numbers<[1], [0], [0], [1], [0, 0, 1, 1], [], []>} : vector<8x128xbf16>, vector<128x128xbf16>, vector<8x128xf32> -> vector<8x128xf32>
    %c3 = arith.constant 3 : index
    %c0_25 = arith.constant 0 : index
    %c0_26 = arith.constant 0 : index
    %34 = vector.load %arg4[%c3, %c0_25, %c0_26] : memref<4x1x128xf32, #tpu.memory_space<vmem>>, vector<1x1x128xf32>
    %35 = vector.shape_cast %34 : vector<1x1x128xf32> to vector<1x128xf32>
    %36 = vector.broadcast %35 : vector<1x128xf32> to vector<8x128xf32>
    %37 = arith.addf %33, %36 : vector<8x128xf32>
    %38 = tpu.iota {dimensions = array<i32: 1>} : vector<8x128xi32>
    %c4_i32 = arith.constant 4 : i32
    %39 = vector.broadcast %c4_i32 : i32 to vector<8x128xi32>
    %40 = arith.cmpi slt, %38, %39 : vector<8x128xi32>
    %cst_27 = arith.constant 0xFF800000 : f32
    %41 = vector.broadcast %cst_27 : f32 to vector<8x128xf32>
    %42 = arith.select %40, %37, %41 : vector<8x128xi1>, vector<8x128xf32>
    %cst_28 = arith.constant dense<0xFF800000> : vector<8xf32>
    %43 = vector.multi_reduction <maximumf>, %42, %cst_28 [1] : vector<8x128xf32> to vector<8xf32>
    %44 = vector.shape_cast %43 : vector<8xf32> to vector<8x1xf32>
    %45 = vector.broadcast %44 : vector<8x1xf32> to vector<8x128xf32>
    %46 = arith.subf %42, %45 : vector<8x128xf32>
    %47 = math.exp %46 : vector<8x128xf32>
    %cst_29 = arith.constant dense<0.000000e+00> : vector<8xf32>
    %48 = vector.multi_reduction <add>, %47, %cst_29 [1] : vector<8x128xf32> to vector<8xf32>
    %49 = vector.shape_cast %48 : vector<8xf32> to vector<8x1xf32>
    %50 = vector.broadcast %49 : vector<8x1xf32> to vector<8x128xf32>
    %51 = arith.divf %47, %50 : vector<8x128xf32>
    %c0_30 = arith.constant 0 : index
    %c0_31 = arith.constant 0 : index
    %52 = vector.load %arg5[%c0_30, %c0_31] : memref<8x128xf32, #tpu.memory_space<vmem>>, vector<8x128xf32>
    tpu.vector_store %arg5[%c0_30, %c0_31], %51 {strides = array<i32>} : memref<8x128xf32, #tpu.memory_space<vmem>>, vector<8x128xf32>,
    return
  }
  func.func @transform_0(%arg0: i32) -> (i32, i32) {
    %c0_i32 = arith.constant 0 : i32
    %c0_i32_0 = arith.constant 0 : i32
    return %arg0, %c0_i32 : i32, i32
  }
  func.func @transform_1(%arg0: i32) -> (i32, i32) {
    %c0_i32 = arith.constant 0 : i32
    %c0_i32_0 = arith.constant 0 : i32
    %c0_i32_1 = arith.constant 0 : i32
    return %c0_i32, %c0_i32_0 : i32, i32
  }
  func.func @transform_2(%arg0: i32) -> (i32, i32, i32) {
    %c0_i32 = arith.constant 0 : i32
    %c0_i32_0 = arith.constant 0 : i32
    %c0_i32_1 = arith.constant 0 : i32
    %c0_i32_2 = arith.constant 0 : i32
    return %c0_i32, %c0_i32_0, %c0_i32_1 : i32, i32, i32
  }
  func.func @transform_3(%arg0: i32) -> (i32, i32, i32) {
    %c0_i32 = arith.constant 0 : i32
    %c0_i32_0 = arith.constant 0 : i32
    %c0_i32_1 = arith.constant 0 : i32
    %c0_i32_2 = arith.constant 0 : i32
    return %c0_i32, %c0_i32_0, %c0_i32_1 : i32, i32, i32
  }
  func.func @transform_4(%arg0: i32) -> (i32, i32) {
    %c0_i32 = arith.constant 0 : i32
    %c0_i32_0 = arith.constant 0 : i32
    return %arg0, %c0_i32 : i32, i32
  }
}

</mosaic_0001>

<bundles_post_ra>
// kernel: tpu_custom_call.1
= control target key start
LH: loop header
LB: loop body
LE: loop exit
PB: predicated region body
PF: predicated region fallthrough
CT: control target
= control target key end

     0   :  { %9 = vsyncpa [#allocation3], 0  ;;  %s834_s0 = inlined_call_operand.hbm [shape: f32[8,16], index: 0, kind: input, shape index: {}]   ;;  %s835_s1 = inlined_call_operand.hbm [shape: bf16[16,128], index: 1, kind: input, shape index: {}]   ;;  %s836_s2 = inlined_call_operand.hbm [shape: bf16[3,128,128], index: 2, kind: input, shape index: {}]   ;;  %s837_s3 = inlined_call_operand.vmem [shape: f32[4,1,128], index: 3, kind: input, shape index: {}]   ;;  %s838_s4 = inlined_call_operand.hbm [shape: f32[8,128], index: 4, kind: output, shape index: {}]  }
   0x1   :  { %10 = vsyncpa [#allocation6], 0 }
   0x2   :  { %11 = vsyncpa [#allocation4], 0  ;;  %s744_s15 = smov [#allocation5]  }
   0x3   :  { %s27_s16 = sshll.u32 %s744_s15, 4  ;;  %s28_s16 = int_to_ptr.vmem [resolvable:$true] %s27_s16 }
   0x4   :  { %s666_s17 = scalar_lea.vmem %s28_s16, 128  ;;  %p671_p1 = scmp.lt.s32.totalorder %s28_s16, %s28_s16 }
   0x5   :  { %p667_p0 = scmp.ne.s32.totalorder %s28_s16, %s666_s17  ;;  %p672_p2 = scmp.lt.s32.totalorder %s666_s17, %s666_s17 }
   0x7   :  { %p673_p3 = por %p672_p2, %p671_p1 }
   0x9   :  { %p674_p4 = pnand %p673_p3, %p667_p0 }
   0xb   :  { %677 = shalt.err (!%p674_p4)
}
   0xc   :  { %s745_s18 = smov 64   ;;  %s746_s19 = smov 4  }
   0xd   :  { %33 = dma.hbm_to_vmem [thread:$0]  %s835_s1, 128, %s28_s16, [#allocation6], %s745_s18, %s745_s18, %s746_s19  }
   0xe   :  { %s747_s22 = smov [#allocation2]   ;;  %s748_s24 = smov [#allocation7]  }
   0xf   :  { %s18_s23 = sshll.u32 %s747_s22, 4  ;;  %s39_s25 = sshll.u32 %s748_s24, 4  ;;  %s19_s23 = int_to_ptr.vmem [resolvable:$true] %s18_s23  ;;  %s40_s25 = int_to_ptr.vmem [resolvable:$true] %s39_s25 }
  0x10   :  { %s686_s26 = scalar_lea.vmem %s19_s23, 128  ;;  %p691_p6 = scmp.lt.s32.totalorder %s19_s23, %s19_s23 }
  0x11   :  { %p687_p5 = scmp.ne.s32.totalorder %s19_s23, %s686_s26  ;;  %p692_p7 = scmp.lt.s32.totalorder %s686_s26, %s686_s26 }
  0x13   :  { %p693_p8 = por %p692_p7, %p691_p6 }
  0x15   :  { %p694_p9 = pnand %p693_p8, %p687_p5 }
  0x17   :  { %697 = shalt.err (!%p694_p9)
}
  0x18   :  { %21 = dma.hbm_to_vmem [thread:$0]  %s834_s0, 128, %s19_s23, [#allocation3]  }
  0x19   :  { %s706_s29 = scalar_lea.vmem %s40_s25, 3072  ;;  %p711_p11 = scmp.lt.s32.totalorder %s40_s25, %s40_s25 }
  0x1a   :  { %p707_p10 = scmp.ne.s32.totalorder %s40_s25, %s706_s29  ;;  %p712_p12 = scmp.lt.s32.totalorder %s706_s29, %s706_s29 }
  0x1c   :  { %p713_p13 = por %p712_p12, %p711_p11 }
  0x1e   :  { %p714_p0 = pnand %p713_p13, %p707_p10 }
  0x20   :  { %717 = shalt.err (!%p714_p0)
}
  0x21   :  { %45 = dma.hbm_to_vmem [thread:$0]  %s836_s2, 3072, %s40_s25, [#allocation6], %s745_s18, %s745_s18, %s746_s19  }
  0x22   :  { %738 = dma.done.wait [#allocation3], 128  }
  0x23   :  { %739 = vsyncadd [#allocation3], 4294967168 }
  0x24   :  { %740 = dma.done.wait [#allocation6], 3200  }
  0x25   :  { %741 = vsyncadd [#allocation6], 4294964096  ;;  %v749_v0 = vmov 0.0   ;;  %vm750_vm0 = vmmov 0   ;;  %v629_v1 = vld [vmem:[#allocation5] sm:$0xff]   ;;  %v58_v2 = vld [vmem:[#allocation2] sm:$0xff]  ;;  %v463_v52 = vlaneseq }
  0x26   :  { %555 = vmatprep.subr.bf16.mxu0 %v749_v0  ;;  %557 = vmatprep.mubr.msk.bf16.mxu0 %vm750_vm0, %v749_v0  ;;  %v59_v3 = vpack.c.bf16 %v58_v2, %v58_v2  ;;  %vm75_vm1 = vcmask 130048   ;;  %v630_v4 = vld [vmem:[#allocation7 + $0x38] sm:$0xff]   ;;  %v631_v5 = vld [vmem:[#allocation7 + $0x30] sm:$0xff]   ;;  %v632_v6 = vld [vmem:[#allocation7 + $0x28] sm:$0xff]   ;;  %s751_s11 = smov [#allocation8]  }
  0x27   :  { %561 = vmatprep.subr.bf16.mxu1 %v749_v0  ;;  %577 = vmatprep.mubr.msk.bf16.mxu1 %vm750_vm0, %v749_v0  ;;  %v633_v7 = vld [vmem:[#allocation7 + $0x20] sm:$0xff]   ;;  %v634_v8 = vld [vmem:[#allocation7 + $0x18] sm:$0xff]   ;;  %v635_v9 = vld [vmem:[#allocation7 + $0x10] sm:$0xff]   ;;  %v464_v53 = vand.u32 127, %v463_v52  ;;  %s483_s12 = sshll.u32 %s751_s11, 4  ;;  %s484_s12 = int_to_ptr.vmem [resolvable:$true] %s483_s12 }
  0x28   :  { %556 = vmatpush3.bf16.msra.mxu0 %v629_v1  ;;  %562 = vmatpush3.bf16.msra.mxu1 %v630_v4  ;;  %v636_v10 = vld [vmem:[#allocation7 + $0x8] sm:$0xff]   ;;  %v637_v11 = vld [vmem:[#allocation7] sm:$0xff]   ;;  %v638_v12 = vld [vmem:[#allocation7 + $0x78] sm:$0xff]   ;;  %p723_p2 = scmp.lt.s32.totalorder %s484_s12, %s484_s12 }
  0x29   :  { %581 = vmatprep.subr.bf16.mxu0 %v749_v0  ;;  %563 = vmatprep.subr.bf16.mxu1 %v749_v0  ;;  %v639_v13 = vld [vmem:[#allocation7 + $0x70] sm:$0xff]   ;;  %v640_v14 = vld [vmem:[#allocation7 + $0x68] sm:$0xff]   ;;  %v641_v15 = vld [vmem:[#allocation7 + $0x60] sm:$0xff]   ;;  %vm465_vm2 = vcmp.lt.s32.totalorder %v464_v53, 4 }
  0x2a   :  { %v642_v16 = vld [vmem:[#allocation7 + $0x58] sm:$0xff]   ;;  %v643_v17 = vld [vmem:[#allocation7 + $0x50] sm:$0xff]   ;;  %v644_v26 = vld [vmem:[#allocation7 + $0x48] sm:$0xff]  }
  0x2b   :  { %558 = vmatmul.mubr.msk.bf16.vlgmr.msra.gmra.mxu0 %vm75_vm1, %v59_v3  ;;  %v493_v18 = vld [vmem:[%s837_s3] ss:$0 sm:$0xff]  ;;  %v645_v27 = vld [vmem:[#allocation7 + $0x40] sm:$0xff]   ;;  %v646_v28 = vld [vmem:[#allocation7 + $0xb8] sm:$0xff]  }
  0x2c   :  { %597 = vmatprep.mubr.msk.bf16.mxu0 %vm750_vm0, %v749_v0  ;;  %564 = vmatpush3.bf16.msra.mxu1 %v631_v5  ;;  %v647_v29 = vld [vmem:[#allocation7 + $0xb0] sm:$0xff]   ;;  %v648_v30 = vld [vmem:[#allocation7 + $0xa8] sm:$0xff]   ;;  %v649_v31 = vld [vmem:[#allocation7 + $0xa0] sm:$0xff]  }
  0x2d   :  { %565 = vmatprep.subr.bf16.mxu1 %v749_v0  ;;  %582 = vmatpush3.bf16.msra.mxu0 %v638_v12  ;;  %v650_v32 = vld [vmem:[#allocation7 + $0x98] sm:$0xff]   ;;  %v651_v33 = vld [vmem:[#allocation7 + $0x90] sm:$0xff]   ;;  %v652_v42 = vld [vmem:[#allocation7 + $0x88] sm:$0xff]  }
  0x2e   :  { %583 = vmatprep.subr.bf16.mxu0 %v749_v0  ;;  %v497_v34 = vld [vmem:[%s837_s3 + $0x1] ss:$0 sm:$0xff]  ;;  %v653_v43 = vld [vmem:[#allocation7 + $0x80] sm:$0xff]   ;;  %v507_v44 = vld [vmem:[%s837_s3 + $0x2] ss:$0 sm:$0xff] }
  0x2f   :  { %v517_v54 = vld [vmem:[%s837_s3 + $0x3] ss:$0 sm:$0xff]  ;;  %s718_s3 = scalar_lea.vmem %s484_s12, 128 }
  0x30   :  { %566 = vmatpush3.bf16.msra.mxu1 %v632_v6  ;;  %p719_p1 = scmp.ne.s32.totalorder %s484_s12, %s718_s3  ;;  %p724_p3 = scmp.lt.s32.totalorder %s718_s3, %s718_s3 }
  0x31   :  { %567 = vmatprep.subr.bf16.mxu1 %v749_v0  ;;  %584 = vmatpush3.bf16.msra.mxu0 %v639_v13 }
  0x32   :  { %585 = vmatprep.subr.bf16.mxu0 %v749_v0  ;;  %p725_p4 = por %p724_p3, %p723_p2 }
  0x34   :  { %568 = vmatpush3.bf16.msra.mxu1 %v633_v7  ;;  %p726_p5 = pnand %p725_p4, %p719_p1 }
  0x35   :  { %569 = vmatprep.subr.bf16.mxu1 %v749_v0  ;;  %586 = vmatpush3.bf16.msra.mxu0 %v640_v14 }
  0x36   :  { %587 = vmatprep.subr.bf16.mxu0 %v749_v0 }
  0x38   :  { %570 = vmatpush3.bf16.msra.mxu1 %v634_v8 }
  0x39   :  { %571 = vmatprep.subr.bf16.mxu1 %v749_v0  ;;  %588 = vmatpush3.bf16.msra.mxu0 %v641_v15 }
  0x3a   :  { %589 = vmatprep.subr.bf16.mxu0 %v749_v0 }
  0x3c   :  { %572 = vmatpush3.bf16.msra.mxu1 %v635_v9 }
  0x3d   :  { %573 = vmatprep.subr.bf16.mxu1 %v749_v0  ;;  %590 = vmatpush3.bf16.msra.mxu0 %v642_v16 }
  0x3e   :  { %591 = vmatprep.subr.bf16.mxu0 %v749_v0 }
  0x40   :  { %574 = vmatpush3.bf16.msra.mxu1 %v636_v10 }
  0x41   :  { %575 = vmatprep.subr.bf16.mxu1 %v749_v0  ;;  %592 = vmatpush3.bf16.msra.mxu0 %v643_v17 }
  0x42   :  { %593 = vmatprep.subr.bf16.mxu0 %v749_v0 }
  0x44   :  { %576 = vmatpush3.bf16.msra.mxu1 %v637_v11 }
  0x45   :  { %601 = vmatprep.subr.bf16.mxu1 %v749_v0  ;;  %594 = vmatpush3.bf16.msra.mxu0 %v644_v26 }
  0x46   :  { %595 = vmatprep.subr.bf16.mxu0 %v749_v0 }
  0x49   :  { %596 = vmatpush3.bf16.msra.mxu0 %v645_v27 }
  0xeb   :  { %v113_v19 = vpop.f32.mrf.mxu0 }
  0xec   :  { %v114_v20 = vadd.f32 %v493_v18, %v113_v19 }
  0xed   :  { %v559_v21 = vpop.f32.mrf.mxu0 }
  0xee   :  { %v119_v22 = vmax.f32 %v114_v20, 0.0 }
  0xef   :  { %v116_v23 = vpop.f32.mrf.mxu0 }
  0xf0   :  { %v120_v24 = vpack.c.bf16 %v119_v22, %v119_v22 }
  0xf1   :  { %v560_v25 = vpop.f32.mrf.mxu0 }
  0xf2   :  { %578 = vmatmul.mubr.bf16.vlgmr.msra.gmra.mxu1 %v120_v24 }
  0xf3   :  { %617 = vmatprep.mubr.msk.bf16.mxu1 %vm750_vm0, %v749_v0  ;;  %602 = vmatpush3.bf16.msra.mxu1 %v646_v28 }
  0xf4   :  { %603 = vmatprep.subr.bf16.mxu1 %v749_v0 }
  0xf7   :  { %604 = vmatpush3.bf16.msra.mxu1 %v647_v29 }
  0xf8   :  { %605 = vmatprep.subr.bf16.mxu1 %v749_v0 }
  0xfb   :  { %606 = vmatpush3.bf16.msra.mxu1 %v648_v30 }
  0xfc   :  { %607 = vmatprep.subr.bf16.mxu1 %v749_v0 }
  0xff   :  { %608 = vmatpush3.bf16.msra.mxu1 %v649_v31 }
 0x100   :  { %609 = vmatprep.subr.bf16.mxu1 %v749_v0 }
 0x103   :  { %610 = vmatpush3.bf16.msra.mxu1 %v650_v32 }
 0x104   :  { %611 = vmatprep.subr.bf16.mxu1 %v749_v0 }
 0x107   :  { %612 = vmatpush3.bf16.msra.mxu1 %v651_v33 }
 0x108   :  { %613 = vmatprep.subr.bf16.mxu1 %v749_v0 }
 0x10b   :  { %614 = vmatpush3.bf16.msra.mxu1 %v652_v42 }
 0x10c   :  { %615 = vmatprep.subr.bf16.mxu1 %v749_v0 }
 0x10f   :  { %616 = vmatpush3.bf16.msra.mxu1 %v653_v43 }
 0x1b2   :  { %v227_v35 = vpop.f32.mrf.mxu1 }
 0x1b3   :  { %v228_v36 = vadd.f32 %v497_v34, %v227_v35 }
 0x1b4   :  { %v579_v37 = vpop.f32.mrf.mxu1 }
 0x1b5   :  { %v233_v38 = vmax.f32 %v228_v36, 0.0 }
 0x1b6   :  { %v230_v39 = vpop.f32.mrf.mxu1 }
 0x1b7   :  { %v234_v40 = vpack.c.bf16 %v233_v38, %v233_v38 }
 0x1b8   :  { %v580_v41 = vpop.f32.mrf.mxu1 }
 0x1b9   :  { %598 = vmatmul.mubr.bf16.vlgmr.msra.gmra.mxu0 %v234_v40 }
 0x279   :  { %v342_v45 = vpop.f32.mrf.mxu0 }
 0x27a   :  { %v343_v46 = vadd.f32 %v507_v44, %v342_v45 }
 0x27b   :  { %v599_v47 = vpop.f32.mrf.mxu0 }
 0x27c   :  { %v348_v48 = vmax.f32 %v343_v46, 0.0 }
 0x27d   :  { %v345_v49 = vpop.f32.mrf.mxu0 }
 0x27e   :  { %v349_v50 = vpack.c.bf16 %v348_v48, %v348_v48 }
 0x27f   :  { %v600_v51 = vpop.f32.mrf.mxu0 }
 0x280   :  { %618 = vmatmul.mubr.bf16.vlgmr.msra.gmra.mxu1 %v349_v50 }
 0x340   :  { %v457_v55 = vpop.f32.mrf.mxu1 }
 0x341   :  { %v458_v56 = vadd.f32 %v517_v54, %v457_v55 }
 0x342   :  { %v619_v57 = vpop.f32.mrf.mxu1 }
 0x343   :  { %v466_v58 = vsel %vm465_vm2, %v458_v56, -inf }
 0x344   :  { %467 = vmax.xlane.f32.xlu0 %v466_v58  ;;  %v460_v59 = vpop.f32.mrf.mxu1 }
 0x346   :  { %v620_v60 = vpop.f32.mrf.mxu1 }
 0x3cd   :  { %v468_v61 = vpop.xlane.xlu0 %467 }
 0x3ce   :  { %v469_v62 = vsub.f32 %v466_v58, %v468_v61 }
 0x3d0   :  { %v470_v63 = vmul.f32 1.442695, %v469_v62 }
 0x3d2   :  { %654 = vpow2.f32 %v470_v63 }
 0x3df   :  { %v655_v0 = vpop.eup %654 }
 0x3e0   :  { %472 = vadd.xlane.f32.xlu0 %v655_v0 }
 0x469   :  { %v473_v1 = vpop.xlane.xlu0 %472 }
 0x46a   :  { %656 = vrcp.f32 %v473_v1 }
 0x477   :  { %v657_v2 = vpop.eup %656 }
 0x478   :  { %v475_v3 = vmul.f32 %v657_v2, %v655_v0 }
 0x47a   :  { %476 = vst [vmem:[#allocation8] sm:$0xff] %v475_v3 }
 0x47b   :  { %729 = shalt.err (!%p726_p5)
}
 0x47c   :  { %486 = dma.vmem_to_hbm [thread:$0]  %s484_s12, 128, %s838_s4, [#allocation4]  }
 0x47d   :  { %742 = dma.done.wait [#allocation4], 128  }
 0x47e   :  { %743 = vsyncadd [#allocation4], 4294967168 }
 0x47f   :  { %490 = vsyncpa [#allocation3], 1 }
 0x480   :  { %491 = vsyncpa [#allocation6], 1 }
 0x481   :  { %492 = vsyncpa [#allocation4], 1 }

</bundles_post_ra>
